<compile_context>
chip_gen: v6e
topology: v6e:2x2x1
jax: 0.10.0
libtpu: 0.0.40
codegen_flags: <defaults>
</compile_context>

<pallas_src>
import functools

import jax
import jax.numpy as jnp
from jax.experimental import pallas as pl
from jax.experimental.pallas import tpu as pltpu


def _cdiv(a, b):
    return -(-a // b)


def _round_up(x, m):
    return _cdiv(x, m) * m


def _pick_tile(total, max_tile, align):
    """Tile size that is a multiple of `align`, <= ~max_tile, minimizing padding."""
    total_a = _round_up(max(total, 1), align)
    nblk = max(1, _cdiv(total_a, max_tile))
    tile = _round_up(_cdiv(total_a, nblk), align)
    nblk = _cdiv(total_a, tile)
    return tile, nblk, tile * nblk


def _vmem_ceiling_bytes():
    cap = 128 * 1024 * 1024
    try:
        info = pltpu.get_tpu_info()
        cap = int(getattr(info, "vmem_capacity_bytes", cap))
    except Exception:
        pass
    # ~96 MiB on v5e/v6e (128 MiB physical), ~48 MiB on v7x (64 MiB physical).
    return (cap * 3) // 4


def _fused_kernel(x_ref, w_ref, shift_ref, o_ref, *, matmul_dtype):
    """1-D M grid: full-K / full-N resident weight, single matmul + epilogue."""
    x = x_ref[...].astype(matmul_dtype)
    y = jnp.dot(x, w_ref[...], preferred_element_type=jnp.float32)
    y = y + shift_ref[...]
    o_ref[...] = jnp.maximum(y, 0.1 * y)          # LeakyReLU(0.1)


def _tiled_kernel(x_ref, w_ref, shift_ref, o_ref, *, matmul_dtype):
    """3-D (M, N, K) grid: accumulate into the resident f32 output block."""
    k = pl.program_id(2)

    @pl.when(k == 0)
    def _init():
        o_ref[...] = jnp.zeros_like(o_ref)

    x = x_ref[...].astype(matmul_dtype)
    o_ref[...] += jnp.dot(x, w_ref[...], preferred_element_type=jnp.float32)

    @pl.when(k == pl.num_programs(2) - 1)
    def _finalize():
        y = o_ref[...] + shift_ref[...]
        o_ref[...] = jnp.maximum(y, 0.1 * y)      # LeakyReLU(0.1)


def bottleneck_layer_forward(x, w_t, gamma, beta, running_mean, running_var,
                             eps=1e-5, bn_flag=True,
                             matmul_dtype=jnp.bfloat16,
                             tm=256, tn=256, tk=512,
                             force_tiled=False):
    """x: (N, in_feat).  w_t: (in_feat, reduction_dim) = fc.weight^T.
    Returns (N, reduction_dim, 1, 1) f32, matching the PyTorch NCHW output."""
    n, in_feat = x.shape
    red = w_t.shape[1]

    # Fold frozen (eval-mode) BatchNorm into per-channel scale/shift (f32).
    if bn_flag:
        inv_std = jax.lax.rsqrt(running_var.astype(jnp.float32) + eps)
        scale = gamma.astype(jnp.float32) * inv_std
        shift = beta.astype(jnp.float32) - running_mean.astype(jnp.float32) * scale
    else:
        scale = jnp.ones((red,), jnp.float32)
        shift = jnp.zeros((red,), jnp.float32)

    # Fold BN scale into the weight columns IN F32, before any low-precision cast.
    w_scaled = w_t.astype(jnp.float32) * scale[None, :]

    x_bytes = jnp.dtype(x.dtype).itemsize
    w_bytes = jnp.dtype(matmul_dtype).itemsize
    m_min = max(8, 32 // x_bytes)                  # sublane min for x's VMEM dtype

    # --- M tiling: minimize padding; ensure >=2 blocks when possible (v7x TCs) ---
    tm_eff, m_blocks, m_pad = _pick_tile(n, tm, m_min)
    if m_blocks == 1 and m_pad >= 2 * m_min:
        tm_eff = _round_up(_cdiv(m_pad, 2), m_min)
        m_blocks = _cdiv(m_pad, tm_eff)
        m_pad = tm_eff * m_blocks

    k_pad = _round_up(in_feat, 128)
    n_pad = _round_up(red, 128)

    vmem_ceiling = _vmem_ceiling_bytes()

    # Fused (resident full-K/full-N weight) working set; conservatively count
    # every operand double-buffered (f32 output, f32 shift).
    fused_bytes = 2 * (tm_eff * k_pad * x_bytes
                       + k_pad * n_pad * w_bytes
                       + n_pad * 4
                       + tm_eff * n_pad * 4)
    use_fused = (not force_tiled) and (fused_bytes <= vmem_ceiling)

    if not use_fused:
        # Fallback tiling (256-aligned N/K preferred via defaults, 128 legal on v5e).
        tn_eff, n_blocks, n_pad = _pick_tile(red, tn, 128)
        tk_eff, k_blocks, k_pad = _pick_tile(in_feat, tk, 128)

    # --- build (possibly padded) operands; skip copies when already aligned ----
    if (n, in_feat) == (m_pad, k_pad):
        xp = x                                       # no pad, no cast round trip
    else:
        xp = jnp.zeros((m_pad, k_pad), x.dtype).at[:n, :in_feat].set(x)

    if (in_feat, red) == (k_pad, n_pad):
        wp = w_scaled.astype(matmul_dtype)
    else:
        wp = jnp.zeros((k_pad, n_pad), matmul_dtype).at[:in_feat, :red].set(
            w_scaled.astype(matmul_dtype))

    shift_p = jnp.zeros((1, n_pad), jnp.float32).at[0, :red].set(shift)

    if use_fused:
        vmem_limit = int(min(max(fused_bytes * 3 // 2, 16 * 1024 * 1024),
                             vmem_ceiling))
        kernel = functools.partial(_fused_kernel, matmul_dtype=matmul_dtype)
        outp = pl.pallas_call(
            kernel,
            out_shape=jax.ShapeDtypeStruct((m_pad, n_pad), jnp.float32),
            grid=(m_blocks,),
            in_specs=[
                pl.BlockSpec((tm_eff, k_pad), lambda i: (i, 0)),
                pl.BlockSpec((k_pad, n_pad), lambda i: (0, 0)),   # resident weight
                pl.BlockSpec((1, n_pad), lambda i: (0, 0)),       # resident shift
            ],
            out_specs=pl.BlockSpec((tm_eff, n_pad), lambda i: (i, 0)),
            compiler_params=pltpu.CompilerParams(
                dimension_semantics=("parallel",),
                vmem_limit_bytes=vmem_limit),
        )(xp, wp, shift_p)
    else:
        tiled_bytes = 2 * (tm_eff * tk_eff * x_bytes
                           + tk_eff * tn_eff * w_bytes
                           + tn_eff * 4
                           + tm_eff * tn_eff * 4)
        vmem_limit = int(min(max(tiled_bytes * 3 // 2, 16 * 1024 * 1024),
                             vmem_ceiling))
        kernel = functools.partial(_tiled_kernel, matmul_dtype=matmul_dtype)
        outp = pl.pallas_call(
            kernel,
            out_shape=jax.ShapeDtypeStruct((m_pad, n_pad), jnp.float32),
            grid=(m_blocks, n_blocks, k_blocks),
            in_specs=[
                pl.BlockSpec((tm_eff, tk_eff), lambda i, j, k: (i, k)),
                pl.BlockSpec((tk_eff, tn_eff), lambda i, j, k: (k, j)),
                pl.BlockSpec((1, tn_eff), lambda i, j, k: (0, j)),
            ],
            out_specs=pl.BlockSpec((tm_eff, tn_eff), lambda i, j, k: (i, j)),
            compiler_params=pltpu.CompilerParams(
                dimension_semantics=("parallel", "parallel", "arbitrary"),
                vmem_limit_bytes=vmem_limit),
        )(xp, wp, shift_p)

    # Slice off padding; `while len(x.shape) < 4: unsqueeze(-1)` -> (N, C, 1, 1)
    return outp[:n, :red].reshape(n, red, 1, 1)


def _reference(x, w_t, gamma, beta, running_mean, running_var, eps, matmul_dtype):
    """Mirrors the kernel math (scale folded into weights in f32, then cast)."""
    scale = gamma / jnp.sqrt(running_var + eps)
    shift = beta - running_mean * scale
    w_s = (w_t.astype(jnp.float32) * scale[None, :]).astype(matmul_dtype)
    y = jnp.dot(x.astype(matmul_dtype), w_s, preferred_element_type=jnp.float32)
    y = y + shift
    y = jnp.maximum(y, 0.1 * y)
    return y.reshape(x.shape[0], w_t.shape[1], 1, 1)


def _reference_unfused(x, w_t, gamma, beta, running_mean, running_var, eps):
    """Literal module semantics in f32: linear -> BN(eval) -> LeakyReLU."""
    y = jnp.dot(x, w_t, preferred_element_type=jnp.float32)
    scale = gamma / jnp.sqrt(running_var + eps)
    shift = beta - running_mean * scale
    y = y * scale + shift
    y = jnp.where(y >= 0.0, y, 0.1 * y)
    return y.reshape(x.shape[0], w_t.shape[1], 1, 1)


def _make_inputs(key, n, in_feat, red):
    kx, kw, kg, km, kv = jax.random.split(key, 5)
    x = jax.random.normal(kx, (n, in_feat), dtype=jnp.float32)
    std = (2.0 / red) ** 0.5   # kaiming-style (fan_out) init for fc.weight^T
    w_t = std * jax.random.normal(kw, (in_feat, red), dtype=jnp.float32)
    gamma = jnp.ones((red,), jnp.float32) + 0.01 * jax.random.normal(kg, (red,), jnp.float32)
    beta = jnp.zeros((red,), jnp.float32)   # bias_freeze=True
    running_mean = 0.1 * jax.random.normal(km, (red,), jnp.float32)
    running_var = jnp.abs(1.0 + 0.1 * jax.random.normal(kv, (red,), jnp.float32))
    return x, w_t, gamma, beta, running_mean, running_var


if __name__ == "__main__":
    key = jax.random.PRNGKey(0)
    k1, k2, k3 = jax.random.split(key, 3)

    # --- Test 1: small shapes (batch=8, in_feat=64, reduction_dim=32), f32 ----
    x, w_t, g, b, rm, rv = _make_inputs(k1, 8, 64, 32)
    out = jax.block_until_ready(
        bottleneck_layer_forward(x, w_t, g, b, rm, rv, matmul_dtype=jnp.float32))
    ref = _reference(x, w_t, g, b, rm, rv, 1e-5, jnp.float32)
    ref_mod = _reference_unfused(x, w_t, g, b, rm, rv, 1e-5)
    assert out.shape == (8, 32, 1, 1)
    assert jnp.allclose(out, ref, atol=1e-4, rtol=1e-4)
    assert jnp.allclose(out, ref_mod, atol=1e-4, rtol=1e-4)

    # --- Test 2: bf16 matmul path (f32 accumulation), same shapes -------------
    out_bf = jax.block_until_ready(
        bottleneck_layer_forward(x, w_t, g, b, rm, rv, matmul_dtype=jnp.bfloat16))
    ref_bf = _reference(x, w_t, g, b, rm, rv, 1e-5, jnp.bfloat16)
    assert out_bf.shape == (8, 32, 1, 1)
    assert jnp.allclose(out_bf, ref_bf, atol=2e-3, rtol=2e-3)
    assert jnp.allclose(out_bf, ref_mod, atol=5e-2, rtol=5e-2)

    # --- Test 3: multiple M blocks on the fused path (batch=48) ---------------
    x, w_t, g, b, rm, rv = _make_inputs(k2, 48, 128, 128)
    out = jax.block_until_ready(
        bottleneck_layer_forward(x, w_t, g, b, rm, rv, matmul_dtype=jnp.float32))
    ref = _reference(x, w_t, g, b, rm, rv, 1e-5, jnp.float32)
    assert out.shape == (48, 128, 1, 1)
    assert jnp.allclose(out, ref, atol=1e-4, rtol=1e-4)

    # --- Test 4: exercise the tiled fallback (forced) with a 2x2x2 grid -------
    x, w_t, g, b, rm, rv = _make_inputs(k3, 32, 256, 256)
    out = jax.block_until_ready(
        bottleneck_layer_forward(x, w_t, g, b, rm, rv, matmul_dtype=jnp.float32,
                                 tn=128, tk=128, force_tiled=True))
    ref = _reference(x, w_t, g, b, rm, rv, 1e-5, jnp.float32)
    assert out.shape == (32, 256, 1, 1)
    assert jnp.allclose(out, ref, atol=1e-4, rtol=1e-4)

    print("KERNEL_OK")
</pallas_src>

<mosaic_0001>
module attributes {stable_mosaic.version = 11 : i64} {
  func.func @_fused_kernel(%arg0: i32, %arg1: memref<8x128xf32, #tpu.memory_space<vmem>>, %arg2: memref<128x128xf32, #tpu.memory_space<vmem>>, %arg3: memref<1x128xf32, #tpu.memory_space<vmem>>, %arg4: memref<8x128xf32, #tpu.memory_space<vmem>>) attributes {dimension_semantics = [#tpu.dimension_semantics<parallel>], iteration_bounds = array<i64: 1>, scalar_prefetch = 0 : i64, scratch_operands = 0 : i64, tpu.core_type = #tpu.core_type<tc>, window_params = [{transform_indices = @transform_0, window_bounds = array<i64: 8, 128>}, {pipeline_mode = #tpu.pipeline_mode<synchronous>, transform_indices = @transform_1, window_bounds = array<i64: 128, 128>}, {pipeline_mode = #tpu.pipeline_mode<synchronous>, transform_indices = @transform_2, window_bounds = array<i64: 1, 128>}, {transform_indices = @transform_3, window_bounds = array<i64: 8, 128>}]} {
    %c0 = arith.constant 0 : index
    %c0_0 = arith.constant 0 : index
    %0 = vector.load %arg1[%c0, %c0_0] : memref<8x128xf32, #tpu.memory_space<vmem>>, vector<8x128xf32>
    %c0_1 = arith.constant 0 : index
    %c0_2 = arith.constant 0 : index
    %1 = vector.load %arg2[%c0_1, %c0_2] : memref<128x128xf32, #tpu.memory_space<vmem>>, vector<128x128xf32>
    %cst = arith.constant dense<0.000000e+00> : vector<8x128xf32>
    %2 = tpu.matmul %0, %1, %cst {dimension_numbers = #tpu.dot_dimension_numbers<[1], [0], [0], [1], [0, 0, 1, 1], [], []>} : vector<8x128xf32>, vector<128x128xf32>, vector<8x128xf32> -> vector<8x128xf32>
    %c0_3 = arith.constant 0 : index
    %c0_4 = arith.constant 0 : index
    %3 = vector.load %arg3[%c0_3, %c0_4] : memref<1x128xf32, #tpu.memory_space<vmem>>, vector<1x128xf32>
    %4 = vector.broadcast %3 : vector<1x128xf32> to vector<8x128xf32>
    %5 = arith.addf %2, %4 : vector<8x128xf32>
    %cst_5 = arith.constant 1.000000e-01 : f32
    %6 = vector.broadcast %cst_5 : f32 to vector<8x128xf32>
    %7 = arith.mulf %6, %5 : vector<8x128xf32>
    %8 = arith.maximumf %5, %7 : vector<8x128xf32>
    %c0_6 = arith.constant 0 : index
    %c0_7 = arith.constant 0 : index
    %9 = vector.load %arg4[%c0_6, %c0_7] : memref<8x128xf32, #tpu.memory_space<vmem>>, vector<8x128xf32>
    tpu.vector_store %arg4[%c0_6, %c0_7], %8 {strides = array<i32>} : memref<8x128xf32, #tpu.memory_space<vmem>>, vector<8x128xf32>,
    return
  }
  func.func @transform_0(%arg0: i32) -> (i32, i32) {
    %c0_i32 = arith.constant 0 : i32
    %c0_i32_0 = arith.constant 0 : i32
    return %arg0, %c0_i32 : i32, i32
  }
  func.func @transform_1(%arg0: i32) -> (i32, i32) {
    %c0_i32 = arith.constant 0 : i32
    %c0_i32_0 = arith.constant 0 : i32
    %c0_i32_1 = arith.constant 0 : i32
    return %c0_i32, %c0_i32_0 : i32, i32
  }
  func.func @transform_2(%arg0: i32) -> (i32, i32) {
    %c0_i32 = arith.constant 0 : i32
    %c0_i32_0 = arith.constant 0 : i32
    %c0_i32_1 = arith.constant 0 : i32
    return %c0_i32, %c0_i32_0 : i32, i32
  }
  func.func @transform_3(%arg0: i32) -> (i32, i32) {
    %c0_i32 = arith.constant 0 : i32
    %c0_i32_0 = arith.constant 0 : i32
    return %arg0, %c0_i32 : i32, i32
  }
}

</mosaic_0001>

<bundles_post_ra>
// kernel: tpu_custom_call.1
= control target key start
LH: loop header
LB: loop body
LE: loop exit
PB: predicated region body
PF: predicated region fallthrough
CT: control target
= control target key end

     0   :  { %8 = vsyncpa [#allocation3], 0  ;;  %s319_s0 = inlined_call_operand.hbm [shape: f32[8,128], index: 0, kind: input, shape index: {}]   ;;  %s320_s1 = inlined_call_operand.hbm [shape: f32[128,128], index: 1, kind: input, shape index: {}]   ;;  %s321_s2 = inlined_call_operand.vmem [shape: f32[1,128], index: 2, kind: input, shape index: {}]   ;;  %s322_s3 = inlined_call_operand.hbm [shape: f32[8,128], index: 3, kind: output, shape index: {}]  }
   0x1   :  { %9 = vsyncpa [#allocation6], 0 }
   0x2   :  { %10 = vsyncpa [#allocation4], 0  ;;  %s280_s12 = smov [#allocation2]   ;;  %s281_s14 = smov [#allocation5]  }
   0x3   :  { %s17_s13 = sshll.u32 %s280_s12, 4  ;;  %s26_s15 = sshll.u32 %s281_s14, 4  ;;  %s18_s13 = int_to_ptr.vmem [resolvable:$true] %s17_s13  ;;  %s27_s15 = int_to_ptr.vmem [resolvable:$true] %s26_s15 }
   0x4   :  { %s222_s16 = scalar_lea.vmem %s18_s13, 128  ;;  %p227_p1 = scmp.lt.s32.totalorder %s18_s13, %s18_s13 }
   0x5   :  { %p223_p0 = scmp.ne.s32.totalorder %s18_s13, %s222_s16  ;;  %p228_p2 = scmp.lt.s32.totalorder %s222_s16, %s222_s16 }
   0x7   :  { %p229_p3 = por %p228_p2, %p227_p1 }
   0x9   :  { %p230_p4 = pnand %p229_p3, %p223_p0 }
   0xb   :  { %233 = shalt.err (!%p230_p4)
}
   0xc   :  { %20 = dma.hbm_to_vmem [thread:$0]  %s319_s0, 128, %s18_s13, [#allocation3]  }
   0xd   :  { %s242_s19 = scalar_lea.vmem %s27_s15, 2048  ;;  %p247_p6 = scmp.lt.s32.totalorder %s27_s15, %s27_s15 }
   0xe   :  { %p243_p5 = scmp.ne.s32.totalorder %s27_s15, %s242_s19  ;;  %p248_p7 = scmp.lt.s32.totalorder %s242_s19, %s242_s19 }
  0x10   :  { %p249_p8 = por %p248_p7, %p247_p6 }
  0x12   :  { %p250_p9 = pnand %p249_p8, %p243_p5 }
  0x14   :  { %253 = shalt.err (!%p250_p9)
}
  0x15   :  { %s282_s20 = smov 128   ;;  %s283_s21 = smov 8  }
  0x16   :  { %32 = dma.hbm_to_vmem [thread:$0]  %s320_s1, 2048, %s27_s15, [#allocation6], %s282_s20, %s282_s20, %s283_s21  }
  0x17   :  { %274 = dma.done.wait [#allocation3], 128  }
  0x18   :  { %275 = vsyncadd [#allocation3], 4294967168 }
  0x19   :  { %276 = dma.done.wait [#allocation6], 2048  }
  0x1a   :  { %277 = vsyncadd [#allocation6], 4294965248  ;;  %v284_v0 = vmov 0.0   ;;  %vm285_vm0 = vmmov 0   ;;  %v57_v1 = vld [vmem:[#allocation5 + $0x78] sm:$0xff]  ;;  %v56_v2 = vld [vmem:[#allocation5 + $0x70] sm:$0xff] }
  0x1b   :  { %172 = vmatprep.subr.mxu0 %v284_v0  ;;  %204 = vmatprep.mubr.msk.f32.mxu0 %vm285_vm0, %v284_v0  ;;  %v55_v3 = vld [vmem:[#allocation5 + $0x68] sm:$0xff]  ;;  %v54_v4 = vld [vmem:[#allocation5 + $0x60] sm:$0xff]  ;;  %v53_v5 = vld [vmem:[#allocation5 + $0x58] sm:$0xff]  ;;  %s286_s24 = smov [#allocation7]  }
  0x1c   :  { %173 = vmatpush3.msra.mxu0 %v57_v1  ;;  %v52_v6 = vld [vmem:[#allocation5 + $0x50] sm:$0xff]  ;;  %v51_v7 = vld [vmem:[#allocation5 + $0x48] sm:$0xff]  ;;  %v50_v8 = vld [vmem:[#allocation5 + $0x40] sm:$0xff]  ;;  %s144_s25 = sshll.u32 %s286_s24, 4  ;;  %s145_s25 = int_to_ptr.vmem [resolvable:$true] %s144_s25 }
  0x1d   :  { %174 = vmatprep.subr.mxu0 %v284_v0  ;;  %v49_v9 = vld [vmem:[#allocation5 + $0x38] sm:$0xff]  ;;  %v48_v10 = vld [vmem:[#allocation5 + $0x30] sm:$0xff]  ;;  %v47_v11 = vld [vmem:[#allocation5 + $0x28] sm:$0xff]  ;;  %s254_s26 = scalar_lea.vmem %s145_s25, 128  ;;  %p259_p11 = scmp.lt.s32.totalorder %s145_s25, %s145_s25 }
  0x1e   :  { %175 = vmatpush3.msra.mxu0 %v56_v2  ;;  %v46_v12 = vld [vmem:[#allocation5 + $0x20] sm:$0xff]  ;;  %v45_v13 = vld [vmem:[#allocation5 + $0x18] sm:$0xff]  ;;  %v44_v14 = vld [vmem:[#allocation5 + $0x10] sm:$0xff]  ;;  %p255_p10 = scmp.ne.s32.totalorder %s145_s25, %s254_s26  ;;  %p260_p12 = scmp.lt.s32.totalorder %s254_s26, %s254_s26 }
  0x1f   :  { %176 = vmatprep.subr.mxu0 %v284_v0  ;;  %v43_v15 = vld [vmem:[#allocation5 + $0x8] sm:$0xff]  ;;  %v42_v16 = vld [vmem:[#allocation5] sm:$0xff]  ;;  %v41_v17 = vld [vmem:[#allocation2] sm:$0xff] }
  0x20   :  { %177 = vmatpush3.msra.mxu0 %v55_v3  ;;  %v154_v18 = vld [vmem:[%s321_s2] ss:$0 sm:$0xff]  ;;  %p261_p13 = por %p260_p12, %p259_p11 }
  0x21   :  { %178 = vmatprep.subr.mxu0 %v284_v0 }
  0x22   :  { %179 = vmatpush3.msra.mxu0 %v54_v4  ;;  %p262_p0 = pnand %p261_p13, %p255_p10 }
  0x23   :  { %180 = vmatprep.subr.mxu0 %v284_v0 }
  0x24   :  { %181 = vmatpush3.msra.mxu0 %v53_v5 }
  0x25   :  { %182 = vmatprep.subr.mxu0 %v284_v0 }
  0x26   :  { %183 = vmatpush3.msra.mxu0 %v52_v6 }
  0x27   :  { %184 = vmatprep.subr.mxu0 %v284_v0 }
  0x28   :  { %185 = vmatpush3.msra.mxu0 %v51_v7 }
  0x29   :  { %186 = vmatprep.subr.mxu0 %v284_v0 }
  0x2a   :  { %187 = vmatpush3.msra.mxu0 %v50_v8 }
  0x2b   :  { %188 = vmatprep.subr.mxu0 %v284_v0 }
  0x2c   :  { %189 = vmatpush3.msra.mxu0 %v49_v9 }
  0x2d   :  { %190 = vmatprep.subr.mxu0 %v284_v0 }
  0x2e   :  { %191 = vmatpush3.msra.mxu0 %v48_v10 }
  0x2f   :  { %192 = vmatprep.subr.mxu0 %v284_v0 }
  0x30   :  { %193 = vmatpush3.msra.mxu0 %v47_v11 }
  0x31   :  { %194 = vmatprep.subr.mxu0 %v284_v0 }
  0x32   :  { %195 = vmatpush3.msra.mxu0 %v46_v12 }
  0x33   :  { %196 = vmatprep.subr.mxu0 %v284_v0 }
  0x34   :  { %197 = vmatpush3.msra.mxu0 %v45_v13 }
  0x35   :  { %198 = vmatprep.subr.mxu0 %v284_v0 }
  0x36   :  { %199 = vmatpush3.msra.mxu0 %v44_v14 }
  0x37   :  { %200 = vmatprep.subr.mxu0 %v284_v0 }
  0x38   :  { %201 = vmatpush3.msra.mxu0 %v43_v15 }
  0x39   :  { %202 = vmatprep.subr.mxu0 %v284_v0 }
  0x3a   :  { %203 = vmatpush3.msra.mxu0 %v42_v16 }
  0x3b   :  { %205 = vmatmul.mubr.f32.vlgmr.msra.gmra.mxu0 %v41_v17 }
  0xfb   :  { %v131_v19 = vpop.f32.mrf.mxu0 }
  0xfc   :  { %v132_v20 = vadd.f32 %v154_v18, %v131_v19 }
  0xfd   :  { %v206_v21 = vpop.f32.mrf.mxu0 }
  0xfe   :  { %v135_v22 = vmul.f32 0.1, %v132_v20 }
 0x100   :  { %v136_v23 = vmax.f32 %v132_v20, %v135_v22 }
 0x102   :  { %137 = vst [vmem:[#allocation7] sm:$0xff] %v136_v23 }
 0x103   :  { %265 = shalt.err (!%p262_p0)
}
 0x104   :  { %147 = dma.vmem_to_hbm [thread:$0]  %s145_s25, 128, %s322_s3, [#allocation4]  }
 0x105   :  { %278 = dma.done.wait [#allocation4], 128  }
 0x106   :  { %279 = vsyncadd [#allocation4], 4294967168 }
 0x107   :  { %151 = vsyncpa [#allocation3], 1 }
 0x108   :  { %152 = vsyncpa [#allocation6], 1 }
 0x109   :  { %153 = vsyncpa [#allocation4], 1 }

</bundles_post_ra>
